<compile_context>
chip_gen: v7x
topology: tpu7x:2x2x1
jax: 0.10.0
libtpu: 0.0.40
codegen_flags: <defaults>
</compile_context>

<pallas_src>
import jax
import jax.numpy as jnp
import numpy as np
from jax.experimental import pallas as pl
from jax.experimental.pallas import tpu as pltpu


def biasfree_layernorm_kernel(x_ref, w_ref, o_ref):
    x = x_ref[...].astype(jnp.float32)                          # (tm, C)
    mu = jnp.mean(x, axis=-1, keepdims=True)                    # (tm, 1)  XLU
    ex2 = jnp.mean(x * x, axis=-1, keepdims=True)               # (tm, 1)  XLU
    var = jnp.maximum(ex2 - mu * mu, 0.0)                       # one-pass var
    inv = jax.lax.rsqrt(var + 1e-5)                             # EUP rsqrt
    # PyTorch module scales x itself (NOT the mean-centered x).
    o_ref[...] = (x * inv * w_ref[...].astype(jnp.float32)).astype(o_ref.dtype)


def _round_down(v, m):
    return (v // m) * m


def _choose_row_tile(M, block_rows, sublane):
    """Pick a rows tile: multiple of `sublane`, <= block_rows, grid >= 2,
    preferring an exact divisor of M (no ragged tail block)."""
    if M <= sublane:
        return M                                   # full-extent rows block
    tm = min(block_rows, M)
    half = _round_down(M // 2, sublane)            # keep grid_m >= 2
    if half >= sublane:
        tm = min(tm, half)
    tm = max(sublane, _round_down(tm, sublane))
    # Prefer a divisor of M near the target so there is no ragged last block.
    for cand in range(tm, max(sublane, tm // 2) - 1, -sublane):
        if M % cand == 0:
            return cand
    return tm                                      # ragged last block is fine


def biasfree_layernorm_pallas(x, weight, *, block_rows=2048):
    """x: (..., C); weight: (C,). Normalizes over the last dim."""
    orig_shape = x.shape
    C = orig_shape[-1]
    assert weight.shape == (C,)
    M = int(np.prod(orig_shape[:-1])) if len(orig_shape) > 1 else 1
    x2 = x.reshape(M, C)
    w2 = weight.reshape(1, C)

    # Sublane granularity: 8 rows for 32-bit dtypes, 16 for 16-bit (bf16 packing).
    sublane = 16 if jnp.dtype(x.dtype).itemsize == 2 else 8
    tm = _choose_row_tile(M, block_rows, sublane)
    grid_m = pl.cdiv(M, tm)

    # VMEM budget: double-buffered in + out at x dtype, plus f32 temporaries.
    itemsize = jnp.dtype(x.dtype).itemsize
    need_bytes = 4 * tm * C * itemsize + 2 * tm * C * 4
    cp_kwargs = dict(dimension_semantics=("parallel",))
    if need_bytes > (32 << 20):
        cp_kwargs["vmem_limit_bytes"] = min(need_bytes + (4 << 20), 64 << 20)

    out2 = pl.pallas_call(
        biasfree_layernorm_kernel,
        out_shape=jax.ShapeDtypeStruct((M, C), x.dtype),
        grid_spec=pltpu.PrefetchScalarGridSpec(
            num_scalar_prefetch=0,
            grid=(grid_m,),
            in_specs=[
                pl.BlockSpec((tm, C), lambda i: (i, 0)),   # rows tile of x
                pl.BlockSpec((1, C), lambda i: (0, 0)),    # weight (resident)
            ],
            out_specs=pl.BlockSpec((tm, C), lambda i: (i, 0)),
        ),
        compiler_params=pltpu.CompilerParams(**cp_kwargs),
    )(x2, w2)

    return out2.reshape(orig_shape)


def biasfree_layernorm_ref(x, weight):
    """Pure-JAX reference mirroring the PyTorch forward."""
    mu = jnp.mean(x, axis=-1, keepdims=True)
    var = jnp.mean((x - mu) ** 2, axis=-1, keepdims=True)
    return x / jnp.sqrt(var + 1e-5) * weight


if __name__ == "__main__":
    # Module config: normalized_shape = 128 (lane-dense channel count).
    # Input laid out like Restormer's LayerNorm usage: (batch, H*W tokens, C).
    B, HW, C = 2, 16 * 16, 128

    key = jax.random.PRNGKey(0)
    kx, kw = jax.random.split(key)
    x = jax.random.normal(kx, (B, HW, C), jnp.float32)
    weight = 1.0 + 0.1 * jax.random.normal(kw, (C,), jnp.float32)

    out = biasfree_layernorm_pallas(x, weight)
    out = jax.block_until_ready(out)

    ref = jax.block_until_ready(biasfree_layernorm_ref(x, weight))
    np.testing.assert_allclose(np.asarray(out), np.asarray(ref),
                               rtol=1e-5, atol=1e-5)

    assert out.shape == x.shape
    print("KERNEL_OK")
</pallas_src>

<mosaic_0001>
module attributes {stable_mosaic.version = 11 : i64} {
  func.func @biasfree_layernorm_kernel(%arg0: i32, %arg1: memref<256x128xf32, #tpu.memory_space<vmem>>, %arg2: memref<1x128xf32, #tpu.memory_space<vmem>>, %arg3: memref<256x128xf32, #tpu.memory_space<vmem>>) attributes {dimension_semantics = [#tpu.dimension_semantics<parallel>], iteration_bounds = array<i64: 2>, scalar_prefetch = 0 : i64, scratch_operands = 0 : i64, tpu.core_type = #tpu.core_type<tc>, window_params = [{transform_indices = @transform_0, window_bounds = array<i64: 256, 128>}, {pipeline_mode = #tpu.pipeline_mode<synchronous>, transform_indices = @transform_1, window_bounds = array<i64: 1, 128>}, {transform_indices = @transform_2, window_bounds = array<i64: 256, 128>}]} {
    %c0 = arith.constant 0 : index
    %c0_0 = arith.constant 0 : index
    %0 = vector.load %arg1[%c0, %c0_0] : memref<256x128xf32, #tpu.memory_space<vmem>>, vector<256x128xf32>
    %cst = arith.constant dense<0.000000e+00> : vector<256xf32>
    %1 = vector.multi_reduction <add>, %0, %cst [1] : vector<256x128xf32> to vector<256xf32>
    %2 = vector.shape_cast %1 : vector<256xf32> to vector<256x1xf32>
    %cst_1 = arith.constant 1.280000e+02 : f32
    %3 = vector.broadcast %cst_1 : f32 to vector<256x1xf32>
    %4 = arith.divf %2, %3 : vector<256x1xf32>
    %5 = arith.mulf %0, %0 : vector<256x128xf32>
    %cst_2 = arith.constant dense<0.000000e+00> : vector<256xf32>
    %6 = vector.multi_reduction <add>, %5, %cst_2 [1] : vector<256x128xf32> to vector<256xf32>
    %7 = vector.shape_cast %6 : vector<256xf32> to vector<256x1xf32>
    %cst_3 = arith.constant 1.280000e+02 : f32
    %8 = vector.broadcast %cst_3 : f32 to vector<256x1xf32>
    %9 = arith.divf %7, %8 : vector<256x1xf32>
    %10 = arith.mulf %4, %4 : vector<256x1xf32>
    %11 = arith.subf %9, %10 : vector<256x1xf32>
    %cst_4 = arith.constant 0.000000e+00 : f32
    %12 = vector.broadcast %cst_4 : f32 to vector<256x1xf32>
    %13 = arith.maximumf %11, %12 : vector<256x1xf32>
    %cst_5 = arith.constant 9.99999974E-6 : f32
    %14 = vector.broadcast %cst_5 : f32 to vector<256x1xf32>
    %15 = arith.addf %13, %14 : vector<256x1xf32>
    %16 = math.rsqrt %15 : vector<256x1xf32>
    %17 = vector.broadcast %16 : vector<256x1xf32> to vector<256x128xf32>
    %18 = arith.mulf %0, %17 : vector<256x128xf32>
    %c0_6 = arith.constant 0 : index
    %c0_7 = arith.constant 0 : index
    %19 = vector.load %arg2[%c0_6, %c0_7] : memref<1x128xf32, #tpu.memory_space<vmem>>, vector<1x128xf32>
    %20 = vector.broadcast %19 : vector<1x128xf32> to vector<256x128xf32>
    %21 = arith.mulf %18, %20 : vector<256x128xf32>
    %c0_8 = arith.constant 0 : index
    %c0_9 = arith.constant 0 : index
    %22 = vector.load %arg3[%c0_8, %c0_9] : memref<256x128xf32, #tpu.memory_space<vmem>>, vector<256x128xf32>
    tpu.vector_store %arg3[%c0_8, %c0_9], %21 {strides = array<i32>} : memref<256x128xf32, #tpu.memory_space<vmem>>, vector<256x128xf32>,
    return
  }
  func.func @transform_0(%arg0: i32) -> (i32, i32) {
    %c0_i32 = arith.constant 0 : i32
    %c0_i32_0 = arith.constant 0 : i32
    return %arg0, %c0_i32 : i32, i32
  }
  func.func @transform_1(%arg0: i32) -> (i32, i32) {
    %c0_i32 = arith.constant 0 : i32
    %c0_i32_0 = arith.constant 0 : i32
    %c0_i32_1 = arith.constant 0 : i32
    return %c0_i32, %c0_i32_0 : i32, i32
  }
  func.func @transform_2(%arg0: i32) -> (i32, i32) {
    %c0_i32 = arith.constant 0 : i32
    %c0_i32_0 = arith.constant 0 : i32
    return %arg0, %c0_i32 : i32, i32
  }
}

</mosaic_0001>

<bundles_post_ra>
// kernel: tpu_custom_call.1
= control target key start
LH: loop header
LB: loop body
LE: loop exit
PB: predicated region body
PF: predicated region fallthrough
CT: control target
= control target key end

     0   :  { %7 = vsyncpa [#allocation3], 0  ;;  %s1593_s0 = inlined_call_operand.hbm [shape: f32[512,128], index: 0, kind: input, shape index: {}]   ;;  %s1594_s1 = inlined_call_operand.vmem [shape: f32[1,128], index: 1, kind: input, shape index: {}]   ;;  %s1595_s2 = inlined_call_operand.hbm [shape: f32[512,128], index: 2, kind: output, shape index: {}]  }
   0x1   :  { %9 = vsyncpa [#allocation3 + $0x1], 0 }
   0x2   :  { %10 = vsyncpa [#allocation4], 0 }
   0x3   :  { %12 = vsyncpa [#allocation4 + $0x1], 0  ;;  %s1021_s9 = smov 0   ;;  %s1023_s10 = smov 0  }
   0x4   :  { %s1025_s11 = smov 0   ;;  %s1027_s12 = smov 0  }
   0x5 LB: > { %s1042_s13 = sadd.s32 4294967295, %s998_s12   ;;  %s771_s14 = sadd.s32 4294967294, %s998_s12   ;;  %s998_s12 = sphi %s1027_s12, %s1670_s12   ;;  %s994_s11 = sphi %s1025_s11, %s1669_s11   ;;  %s990_s10 = sphi %s1023_s10, %s1668_s10   ;;  %s986_s9 = sphi %s1021_s9, %s1667_s9  }
   0x6   : > { %s1046_s15 = sadd.s32 1, %s998_s12   ;;  %s25_s16 = sadd.s32 1, %s994_s11 }
   0x7   : > { %s22_s17 = ssub.s32 %s998_s12, %s1046_s15  ;;  %p32_p0 = scmp.ne.s32.totalorder %s994_s11, %s990_s10 }
   0x8   : > { %p23_p1 = scmp.eq.s32.totalorder %s22_s17, 0  ;;  %p33_p2 = scmp.eq.s32.totalorder %s998_s12, 0 }
   0x9   : > { %p38_p3 = scmp.ne.s32.totalorder %s990_s10, %s986_s9  ;;  %p39_p4 = scmp.eq.s32.totalorder %s1042_s13, 0 }
   0xa   : > { %s1058_s18 = scalar_select %p23_p1, %s994_s11, %s25_s16  }
   0xb   : > { %p1060_p5 = por %p33_p2, %p32_p0  ;;  %p1064_p6 = por %p39_p4, %p38_p3 }
   0xc   : > { %p83_p7 = scmp.eq.s32.totalorder %s1042_s13, 1  ;;  %p89_p8 = scmp.eq.s32.totalorder %s771_s14, 1 }
   0xd   : > { %p800_p10 = scmp.lt.s32.totalorder %s998_s12, 2  ;;  %s112_s23 = sand.u32 1, %s994_s11  }
   0xe   : > { %p1071_p11 = por %p83_p7, %p32_p0  ;;  %p1075_p12 = por %p89_p8, %p38_p3 }
   0xf   : > { %s786_s24 = sshll.u32 %s998_s12, 12  ;;  %s774_s25 = sshll.u32 %s112_s23, 8 }
  0x10   : > { %s1617_s21 = scalar_select %p1071_p11, 1, 0 }
  0x11   : > { %s1618_s22 = scalar_select %p1075_p12, 1, 0 }
  0x12   : > { %s1084_s28 = scalar_lea.hbm %s1593_s0, %s786_s24  ;;  %s116_s29 = scalar_lea.vmem [#allocation2], %s774_s25 }
  0x13   : > { %s123_s30 = sshll.u32 %s116_s29, 4  ;;  %p1088_p13 = pnand %p800_p10, %p1060_p5  ;;  %s1092_s30 = int_to_ptr.vmem [resolvable:$true] %s123_s30 }
  0x14   : > { %s1094_s4 = scalar_lea.sflag [#allocation3], %s112_s23  ;;  %s902_s5 = scalar_lea.hbm %s1084_s28, 4096 }
  0x15   : > { %p903_p0 = scmp.ne.s32.totalorder %s1084_s28, %s902_s5  ;;  %p904_p1 = pneg %p1088_p13 }
  0x16   : > { %s907_s8 = scalar_lea.hbm %s1593_s0, 8192  ;;  %p908_p4 = scmp.lt.u32.totalorder %s1084_s28, %s1593_s0 }
  0x17   : > { %p905_p2 = pnand %p904_p1, %p903_p0  ;;  %p909_p5 = scmp.lt.u32.totalorder %s907_s8, %s902_s5 }
  0x18   : > { %p911_p8 = scmp.lt.u32.totalorder %s902_s5, %s1084_s28 }
  0x19   : > { %p906_p3 = pneg %p905_p2  ;;  %p910_p7 = por %p909_p5, %p908_p4 }
  0x1b   : > { %p912_p10 = por %p911_p8, %p910_p7 }
  0x1d   : > { %p913_p9 = pnand %p912_p10, %p906_p3 }
  0x1f   : > { %916 = shalt.err (!%p913_p9)
}
  0x20   : > { %s917_s17 = scalar_lea.vmem %s1092_s30, 4096  ;;  %s1000_s19 = smov [#allocation2]  }
  0x21   : > { %p918_p0 = scmp.ne.s32.totalorder %s1092_s30, %s917_s17  ;;  %s922_s23 = sshll.u32 %s1000_s19, 4  ;;  %s923_s23 = int_to_ptr.vmem [resolvable:$false] %s922_s23 }
  0x22   : > { %s924_s24 = scalar_lea.vmem %s923_s23, 8192  ;;  %p925_p11 = scmp.lt.s32.totalorder %s1092_s30, %s923_s23 }
  0x23   : > { %p920_p2 = pnand %p918_p0, %p904_p1  ;;  %p926_p4 = scmp.lt.s32.totalorder %s924_s24, %s917_s17 }
  0x25   : > { %p921_p12 = pneg %p920_p2  ;;  %p927_p5 = por %p926_p4, %p925_p11 }
  0x27   : > { %p928_p7 = pnand %p927_p5, %p921_p12 }
  0x29   : > { %931 = shalt.err (!%p928_p7)
}
  0x2a   : > { %s1001_s25 = smov 128   ;;  %s1002_s26 = smov 8  }
  0x2b   : > { %795 = dma.hbm_to_vmem [thread:$0]  (!%p1088_p13), %s1084_s28, 4096, %s1092_s30, %s1094_s4, %s1001_s25, %s1001_s25, %s1002_s26  }
  0x2c   : > { %p777_p9 = scmp.ge.s32.totalorder %s998_s12, 1  ;;  %p131_p1 = scmp.lt.s32.totalorder %s998_s12, 3 }
  0x2e   : > { %p132_p3 = pnand %p777_p9, %p131_p1 }
  0x30   : > { %135 = sbr.rel (%p132_p3) target bundleno = 365 (0x16d), region = 28 }
  0x37   : > { %s1125_s27 = sand.u32 1, %s990_s10  }
  0x38   : > { %s778_s29 = sshll.u32 %s1125_s27, 8  ;;  %s138_s5 = scalar_lea.sflag [#allocation3], %s1125_s27 }
  0x39   : > { %s1131_s6 = scalar_lea.vmem [#allocation2], %s778_s29 }
  0x3a   : > { %977 = dma.done.wait (%p1064_p6), %s138_s5, 4096  }
  0x3b   : > { %979 = vsyncadd (%p1064_p6), %s138_s5, 4294963200  ;;  %v1138_v0 = vld [vmem:[%s1131_s6 + $0x10] sm:$0xff]  ;;  %v1141_v1 = vld [vmem:[%s1131_s6] sm:$0xff]  ;;  %s1411_s30 = scalar_lea.vmem [#allocation5], %s778_s29  ;;  %s787_s3 = sshll.u32 %s1042_s13, 12 }
  0x3c   : > { %200 = vadd.xlane.f32.xlu1 %v1138_v0  ;;  %196 = vadd.xlane.f32.xlu0 %v1141_v1  ;;  %v1146_v2 = vld [vmem:[%s1131_s6 + $0x18] sm:$0xff]  ;;  %v1149_v3 = vld [vmem:[%s1131_s6 + $0x8] sm:$0xff]  ;;  %v1157_v5 = vld [vmem:[%s1131_s6 + $0x20] sm:$0xff]  ;;  %v293_v33 = vmul.f32 %v1141_v1, %v1141_v1  ;;  %v295_v35 = vmul.f32 %v1138_v0, %v1138_v0  ;;  %s698_s4 = sshll.u32 %s1411_s30, 4  ;;  %s1544_s14 = scalar_lea.hbm %s1595_s2, %s787_s3  ;;  %s1546_s4 = int_to_ptr.vmem [resolvable:$true] %s698_s4 }
  0x3d   : > { %v1154_v4 = vld [vmem:[%s1131_s6 + $0x28] sm:$0xff]  ;;  %v1162_v6 = vld [vmem:[%s1131_s6 + $0x38] sm:$0xff]  ;;  %v1165_v7 = vld [vmem:[%s1131_s6 + $0x30] sm:$0xff]  ;;  %v294_v32 = vmul.f32 %v1149_v3, %v1149_v3  ;;  %v296_v34 = vmul.f32 %v1146_v2, %v1146_v2  ;;  %v297_v37 = vmul.f32 %v1157_v5, %v1157_v5  ;;  %s685_s13 = scalar_lea.sflag [#allocation4], %s1125_s27  ;;  %s932_s16 = scalar_lea.vmem %s1546_s4, 4096 }
  0x3e   : > { %v1170_v8 = vld [vmem:[%s1131_s6 + $0x48] sm:$0xff]  ;;  %v1173_v9 = vld [vmem:[%s1131_s6 + $0x40] sm:$0xff]  ;;  %v1178_v10 = vld [vmem:[%s1131_s6 + $0x58] sm:$0xff]  ;;  %v298_v36 = vmul.f32 %v1154_v4, %v1154_v4  ;;  %v300_v38 = vmul.f32 %v1162_v6, %v1162_v6  ;;  %v299_v39 = vmul.f32 %v1165_v7, %v1165_v7  ;;  %p933_p6 = scmp.ne.s32.totalorder %s1546_s4, %s932_s16  ;;  %p1664_p11 = scmp.ne.s32.totalorder %s1617_s21, 0 }
  0x3f   : > { %v1181_v11 = vld [vmem:[%s1131_s6 + $0x50] sm:$0xff]  ;;  %v1186_v12 = vld [vmem:[%s1131_s6 + $0x68] sm:$0xff]  ;;  %v1189_v13 = vld [vmem:[%s1131_s6 + $0x60] sm:$0xff]  ;;  %v302_v40 = vmul.f32 %v1170_v8, %v1170_v8  ;;  %v301_v41 = vmul.f32 %v1173_v9, %v1173_v9  ;;  %v304_v42 = vmul.f32 %v1178_v10, %v1178_v10  ;;  %s1003_s17 = smov [#allocation5]  }
  0x40   : > { %202 = vadd.xlane.f32.xlu1 %v1146_v2  ;;  %198 = vadd.xlane.f32.xlu0 %v1149_v3  ;;  %v1194_v14 = vld [vmem:[%s1131_s6 + $0x78] sm:$0xff]  ;;  %v1197_v15 = vld [vmem:[%s1131_s6 + $0x70] sm:$0xff]  ;;  %v1202_v16 = vld [vmem:[%s1131_s6 + $0x88] sm:$0xff]  ;;  %v303_v43 = vmul.f32 %v1181_v11, %v1181_v11  ;;  %v306_v44 = vmul.f32 %v1186_v12, %v1186_v12  ;;  %v305_v45 = vmul.f32 %v1189_v13, %v1189_v13  ;;  %p934_p12 = pnand %p933_p6, %p1664_p11  ;;  %s936_s19 = sshll.u32 %s1003_s17, 4  ;;  %s937_s19 = int_to_ptr.vmem [resolvable:$false] %s936_s19 }
  0x41   : > { %1620 = vst [vmem:[#allocation8_spill] sm:$0xff] %v1194_v14  ;;  %1621 = vst [vmem:[#allocation9_spill] sm:$0xff] %v1197_v15  ;;  %v1205_v17 = vld [vmem:[%s1131_s6 + $0x80] sm:$0xff]  ;;  %v1210_v18 = vld [vmem:[%s1131_s6 + $0x98] sm:$0xff]  ;;  %v308_v46 = vmul.f32 %v1194_v14, %v1194_v14  ;;  %v307_v47 = vmul.f32 %v1197_v15, %v1197_v15  ;;  %v310_v48 = vmul.f32 %v1202_v16, %v1202_v16  ;;  %s938_s23 = scalar_lea.vmem %s937_s19, 8192  ;;  %p939_p8 = scmp.lt.s32.totalorder %s1546_s4, %s937_s19 }
  0x42   : > { %1622 = vst [vmem:[#allocation10_spill] sm:$0xff] %v1202_v16  ;;  %1623 = vst [vmem:[#allocation11_spill] sm:$0xff] %v1205_v17  ;;  %v1213_v19 = vld [vmem:[%s1131_s6 + $0x90] sm:$0xff]  ;;  %v1218_v20 = vld [vmem:[%s1131_s6 + $0xa8] sm:$0xff]  ;;  %v309_v49 = vmul.f32 %v1205_v17, %v1205_v17  ;;  %v312_v50 = vmul.f32 %v1210_v18, %v1210_v18  ;;  %p935_p13 = pneg %p934_p12  ;;  %p940_p10 = scmp.lt.s32.totalorder %s938_s23, %s932_s16 }
  0x43   : > { %1624 = vst [vmem:[#allocation12_spill] sm:$0xff] %v1210_v18  ;;  %1625 = vst [vmem:[#allocation13_spill] sm:$0xff] %v1213_v19  ;;  %v1221_v21 = vld [vmem:[%s1131_s6 + $0xa0] sm:$0xff]  ;;  %v1226_v22 = vld [vmem:[%s1131_s6 + $0xb8] sm:$0xff]  ;;  %v311_v51 = vmul.f32 %v1213_v19, %v1213_v19  ;;  %v314_v52 = vmul.f32 %v1218_v20, %v1218_v20 }
  0x44   : > { %206 = vadd.xlane.f32.xlu1 %v1154_v4  ;;  %204 = vadd.xlane.f32.xlu0 %v1157_v5  ;;  %1626 = vst [vmem:[#allocation14_spill] sm:$0xff] %v1218_v20  ;;  %1627 = vst [vmem:[#allocation15_spill] sm:$0xff] %v1221_v21  ;;  %v1229_v23 = vld [vmem:[%s1131_s6 + $0xb0] sm:$0xff]  ;;  %v1234_v24 = vld [vmem:[%s1131_s6 + $0xc8] sm:$0xff]  ;;  %v313_v53 = vmul.f32 %v1221_v21, %v1221_v21  ;;  %v316_v54 = vmul.f32 %v1226_v22, %v1226_v22  ;;  %p941_p0 = por %p940_p10, %p939_p8 }
  0x45   : > { %1628 = vst [vmem:[#allocation16_spill] sm:$0xff] %v1226_v22  ;;  %1629 = vst [vmem:[#allocation17_spill] sm:$0xff] %v1229_v23  ;;  %v1237_v25 = vld [vmem:[%s1131_s6 + $0xc0] sm:$0xff]  ;;  %v1242_v26 = vld [vmem:[%s1131_s6 + $0xd8] sm:$0xff]  ;;  %v315_v55 = vmul.f32 %v1229_v23, %v1229_v23  ;;  %v318_v56 = vmul.f32 %v1234_v24, %v1234_v24 }
  0x46   : > { %1630 = vst [vmem:[#allocation18_spill] sm:$0xff] %v1234_v24  ;;  %1631 = vst [vmem:[#allocation19_spill] sm:$0xff] %v1237_v25  ;;  %v1245_v27 = vld [vmem:[%s1131_s6 + $0xd0] sm:$0xff]  ;;  %v1250_v28 = vld [vmem:[%s1131_s6 + $0xe8] sm:$0xff]  ;;  %v317_v57 = vmul.f32 %v1237_v25, %v1237_v25  ;;  %v320_v58 = vmul.f32 %v1242_v26, %v1242_v26  ;;  %p942_p2 = pnand %p941_p0, %p935_p13 }
  0x47   : > { %1632 = vst [vmem:[#allocation20_spill] sm:$0xff] %v1242_v26  ;;  %1633 = vst [vmem:[#allocation21_spill] sm:$0xff] %v1245_v27  ;;  %v1253_v29 = vld [vmem:[%s1131_s6 + $0xe0] sm:$0xff]  ;;  %v1258_v30 = vld [vmem:[%s1131_s6 + $0xf8] sm:$0xff]  ;;  %v319_v59 = vmul.f32 %v1245_v27, %v1245_v27  ;;  %v322_v60 = vmul.f32 %v1250_v28, %v1250_v28 }
  0x48   : > { %210 = vadd.xlane.f32.xlu1 %v1162_v6  ;;  %208 = vadd.xlane.f32.xlu0 %v1165_v7  ;;  %1634 = vst [vmem:[#allocation22_spill] sm:$0xff] %v1250_v28  ;;  %1635 = vst [vmem:[#allocation23_spill] sm:$0xff] %v1253_v29  ;;  %v1261_v31 = vld [vmem:[%s1131_s6 + $0xf0] sm:$0xff]  ;;  %v321_v61 = vmul.f32 %v1253_v29, %v1253_v29  ;;  %v324_v62 = vmul.f32 %v1258_v30, %v1258_v30 }
  0x49   : > { %1636 = vst [vmem:[#allocation24_spill] sm:$0xff] %v1258_v30  ;;  %1637 = vst [vmem:[#allocation25_spill] sm:$0xff] %v1261_v31  ;;  %v323_v63 = vmul.f32 %v1261_v31, %v1261_v31 }
  0x4c   : > { %214 = vadd.xlane.f32.xlu1 %v1170_v8  ;;  %212 = vadd.xlane.f32.xlu0 %v1173_v9 }
  0x50   : > { %218 = vadd.xlane.f32.xlu1 %v1178_v10  ;;  %216 = vadd.xlane.f32.xlu0 %v1181_v11 }
  0x54   : > { %222 = vadd.xlane.f32.xlu1 %v1186_v12  ;;  %220 = vadd.xlane.f32.xlu0 %v1189_v13 }
  0x58   : > { %226 = vadd.xlane.f32.xlu1 %v1194_v14  ;;  %224 = vadd.xlane.f32.xlu0 %v1197_v15 }
  0x5c   : > { %230 = vadd.xlane.f32.xlu1 %v1202_v16  ;;  %228 = vadd.xlane.f32.xlu0 %v1205_v17 }
  0x60   : > { %234 = vadd.xlane.f32.xlu1 %v1210_v18  ;;  %232 = vadd.xlane.f32.xlu0 %v1213_v19 }
  0x64   : > { %238 = vadd.xlane.f32.xlu1 %v1218_v20  ;;  %236 = vadd.xlane.f32.xlu0 %v1221_v21 }
  0x68   : > { %242 = vadd.xlane.f32.xlu1 %v1226_v22  ;;  %240 = vadd.xlane.f32.xlu0 %v1229_v23 }
  0x6c   : > { %246 = vadd.xlane.f32.xlu1 %v1234_v24  ;;  %244 = vadd.xlane.f32.xlu0 %v1237_v25 }
  0x70   : > { %250 = vadd.xlane.f32.xlu1 %v1242_v26  ;;  %248 = vadd.xlane.f32.xlu0 %v1245_v27 }
  0x74   : > { %254 = vadd.xlane.f32.xlu1 %v1250_v28  ;;  %252 = vadd.xlane.f32.xlu0 %v1253_v29 }
  0x78   : > { %258 = vadd.xlane.f32.xlu1 %v1258_v30  ;;  %256 = vadd.xlane.f32.xlu0 %v1261_v31 }
  0x7c   : > { %327 = vadd.xlane.f32.xlu1 %v294_v32  ;;  %325 = vadd.xlane.f32.xlu0 %v293_v33 }
  0x80   : > { %331 = vadd.xlane.f32.xlu1 %v296_v34  ;;  %329 = vadd.xlane.f32.xlu0 %v295_v35 }
  0x84   : > { %335 = vadd.xlane.f32.xlu1 %v298_v36  ;;  %333 = vadd.xlane.f32.xlu0 %v297_v37 }
  0x88   : > { %339 = vadd.xlane.f32.xlu1 %v300_v38  ;;  %337 = vadd.xlane.f32.xlu0 %v299_v39 }
  0x8c   : > { %343 = vadd.xlane.f32.xlu1 %v302_v40  ;;  %341 = vadd.xlane.f32.xlu0 %v301_v41 }
  0x90   : > { %347 = vadd.xlane.f32.xlu1 %v304_v42  ;;  %345 = vadd.xlane.f32.xlu0 %v303_v43 }
  0x94   : > { %351 = vadd.xlane.f32.xlu1 %v306_v44  ;;  %349 = vadd.xlane.f32.xlu0 %v305_v45 }
  0x98   : > { %355 = vadd.xlane.f32.xlu1 %v308_v46  ;;  %353 = vadd.xlane.f32.xlu0 %v307_v47 }
  0x9c   : > { %359 = vadd.xlane.f32.xlu1 %v310_v48  ;;  %357 = vadd.xlane.f32.xlu0 %v309_v49 }
  0xa0   : > { %363 = vadd.xlane.f32.xlu1 %v312_v50  ;;  %361 = vadd.xlane.f32.xlu0 %v311_v51 }
  0xa4   : > { %367 = vadd.xlane.f32.xlu1 %v314_v52  ;;  %365 = vadd.xlane.f32.xlu0 %v313_v53 }
  0xa8   : > { %371 = vadd.xlane.f32.xlu1 %v316_v54  ;;  %369 = vadd.xlane.f32.xlu0 %v315_v55 }
  0xac   : > { %375 = vadd.xlane.f32.xlu1 %v318_v56  ;;  %373 = vadd.xlane.f32.xlu0 %v317_v57 }
  0xb0   : > { %379 = vadd.xlane.f32.xlu1 %v320_v58  ;;  %377 = vadd.xlane.f32.xlu0 %v319_v59 }
  0xb4   : > { %383 = vadd.xlane.f32.xlu1 %v322_v60  ;;  %381 = vadd.xlane.f32.xlu0 %v321_v61 }
  0xb8   : > { %387 = vadd.xlane.f32.xlu1 %v324_v62  ;;  %385 = vadd.xlane.f32.xlu0 %v323_v63 }
  0xc9   : > { %v201_v32 = vpop.xlane.xlu1 %200  ;;  %v197_v33 = vpop.xlane.xlu0 %196 }
  0xca   : > { %v261_v31 = vmul.f32 0.0078125, %v197_v33  ;;  %v263_v29 = vmul.f32 0.0078125, %v201_v32 }
  0xcc   : > { %v421_v21 = vmul.f32 %v261_v31, %v261_v31  ;;  %v423_v17 = vmul.f32 %v263_v29, %v263_v29 }
  0xcd   : > { %v203_v34 = vpop.xlane.xlu1 %202  ;;  %v199_v35 = vpop.xlane.xlu0 %198 }
  0xce   : > { %v262_v30 = vmul.f32 0.0078125, %v199_v35  ;;  %v264_v28 = vmul.f32 0.0078125, %v203_v34 }
  0xd0   : > { %v422_v20 = vmul.f32 %v262_v30, %v262_v30  ;;  %v424_v16 = vmul.f32 %v264_v28, %v264_v28 }
  0xd1   : > { %v207_v36 = vpop.xlane.xlu1 %206  ;;  %v205_v37 = vpop.xlane.xlu0 %204 }
  0xd2   : > { %v266_v27 = vmul.f32 0.0078125, %v207_v36  ;;  %v265_v26 = vmul.f32 0.0078125, %v205_v37 }
  0xd4   : > { %v425_v14 = vmul.f32 %v265_v26, %v265_v26 }
  0xd5   : > { %v211_v38 = vpop.xlane.xlu1 %210  ;;  %v209_v39 = vpop.xlane.xlu0 %208 }
  0xd6   : > { %v268_v25 = vmul.f32 0.0078125, %v211_v38  ;;  %v267_v24 = vmul.f32 0.0078125, %v209_v39 }
  0xd8   : > { %v428_v35 = vmul.f32 %v268_v25, %v268_v25  ;;  %v427_v32 = vmul.f32 %v267_v24, %v267_v24 }
  0xd9   : > { %v215_v40 = vpop.xlane.xlu1 %214  ;;  %v213_v41 = vpop.xlane.xlu0 %212 }
  0xda   : > { %v270_v15 = vmul.f32 0.0078125, %v215_v40  ;;  %v269_v34 = vmul.f32 0.0078125, %v213_v41 }
  0xdc   : > { %v1361_v30 = vmul.f32 %v270_v15, %v270_v15 }
  0xdd   : > { %v219_v42 = vpop.xlane.xlu1 %218  ;;  %v217_v43 = vpop.xlane.xlu0 %216 }
  0xde   : > { %v272_v36 = vmul.f32 0.0078125, %v219_v42 }
  0xe1   : > { %v223_v44 = vpop.xlane.xlu1 %222  ;;  %v221_v45 = vpop.xlane.xlu0 %220 }
  0xe2   : > { %v273_v28 = vmul.f32 0.0078125, %v221_v45 }
  0xe5   : > { %v227_v46 = vpop.xlane.xlu1 %226  ;;  %v225_v47 = vpop.xlane.xlu0 %224 }
  0xe6   : > { %v275_v24 = vmul.f32 0.0078125, %v225_v47 }
  0xe9   : > { %v1329_v48 = vpop.xlane.xlu1 %230  ;;  %v1331_v49 = vpop.xlane.xlu0 %228 }
  0xea   : > { %v278_v47 = vmul.f32 0.0078125, %v1329_v48 }
  0xed   : > { %v1333_v50 = vpop.xlane.xlu1 %234  ;;  %v1335_v51 = vpop.xlane.xlu0 %232 }
  0xf1   : > { %v1337_v52 = vpop.xlane.xlu1 %238  ;;  %v1339_v53 = vpop.xlane.xlu0 %236 }
  0xf2   : > { %v281_v48 = vmul.f32 0.0078125, %v1339_v53 }
  0xf5   : > { %v1341_v54 = vpop.xlane.xlu1 %242  ;;  %v1343_v55 = vpop.xlane.xlu0 %240 }
  0xf9   : > { %v1345_v56 = vpop.xlane.xlu1 %246  ;;  %v1347_v57 = vpop.xlane.xlu0 %244 }
  0xfd   : > { %v1349_v58 = vpop.xlane.xlu1 %250  ;;  %v1351_v59 = vpop.xlane.xlu0 %248 }
 0x101   : > { %v1353_v60 = vpop.xlane.xlu1 %254  ;;  %v1355_v61 = vpop.xlane.xlu0 %252 }
 0x102   : > { %1638 = vst [vmem:[#allocation26_spill] sm:$0xff] %v1353_v60  ;;  %1639 = vst [vmem:[#allocation27_spill] sm:$0xff] %v1355_v61 }
 0x105   : > { %v1357_v62 = vpop.xlane.xlu1 %258  ;;  %v1359_v63 = vpop.xlane.xlu0 %256 }
 0x106   : > { %1640 = vst [vmem:[#allocation28_spill] sm:$0xff] %v1357_v62  ;;  %1641 = vst [vmem:[#allocation29_spill] sm:$0xff] %v1359_v63  ;;  %v426_v62 = vmul.f32 %v266_v27, %v266_v27 }
 0x109   : > { %v328_v23 = vpop.xlane.xlu1 %327  ;;  %v326_v22 = vpop.xlane.xlu0 %325 }
 0x10a   : > { %v390_v19 = vmul.f32 0.0078125, %v328_v23  ;;  %v389_v18 = vmul.f32 0.0078125, %v326_v22  ;;  %v271_v22 = vmul.f32 0.0078125, %v217_v43  ;;  %v274_v23 = vmul.f32 0.0078125, %v223_v44 }
 0x10c   : > { %v454_v63 = vsub.f32 %v390_v19, %v422_v20  ;;  %v453_v33 = vsub.f32 %v389_v18, %v421_v21  ;;  %v1363_v18 = vmul.f32 %v269_v34, %v269_v34  ;;  %v1365_v20 = vmul.f32 %v272_v36, %v272_v36 }
 0x10d   : > { %v332_v37 = vpop.xlane.xlu1 %331  ;;  %v330_v38 = vpop.xlane.xlu0 %329  ;;  %v276_v21 = vmul.f32 0.0078125, %v227_v46  ;;  %v1369_v43 = vmul.f32 %v274_v23, %v274_v23  ;;  %v1375_v46 = vmul.f32 %v275_v24, %v275_v24 }
 0x10e   : > { %v486_v39 = vmax.f32 %v454_v63, 0.0  ;;  %v485_v61 = vmax.f32 %v453_v33, 0.0  ;;  %v392_v60 = vmul.f32 0.0078125, %v332_v37  ;;  %v391_v31 = vmul.f32 0.0078125, %v330_v38 }
 0x10f   : > { %v1367_v63 = vmul.f32 %v271_v22, %v271_v22  ;;  %v280_v22 = vmul.f32 0.0078125, %v1333_v50 }
 0x110   : > { %v518_v29 = vadd.f32 1e-05, %v486_v39  ;;  %v517_v27 = vadd.f32 1e-05, %v485_v61  ;;  %v456_v26 = vsub.f32 %v392_v60, %v424_v16  ;;  %v455_v19 = vsub.f32 %v391_v31, %v423_v17 }
 0x111   : > { %v336_v25 = vpop.xlane.xlu1 %335  ;;  %v334_v40 = vpop.xlane.xlu0 %333  ;;  %v1371_v16 = vmul.f32 %v273_v28, %v273_v28  ;;  %v1373_v61 = vmul.f32 %v276_v21, %v276_v21  ;;  %v277_v31 = vmul.f32 0.0078125, %v1331_v49 }
 0x112   : > { %838 = vrsqrt.f32 %v518_v29  ;;  %v488_v41 = vmax.f32 %v456_v26, 0.0  ;;  %v487_v42 = vmax.f32 %v455_v19, 0.0  ;;  %v394_v15 = vmul.f32 0.0078125, %v336_v25 }
 0x113   : > { %840 = vrsqrt.f32 %v517_v27  ;;  %v393_v44 = vmul.f32 0.0078125, %v334_v40  ;;  %v1381_v26 = vmul.f32 %v278_v47, %v278_v47  ;;  %v1385_v40 = vmul.f32 %v277_v31, %v277_v31 }
 0x114   : > { %v520_v17 = vadd.f32 1e-05, %v488_v41  ;;  %v519_v45 = vadd.f32 1e-05, %v487_v42  ;;  %v458_v60 = vsub.f32 %v394_v15, %v426_v62  ;;  %v279_v62 = vmul.f32 0.0078125, %v1335_v51 }
 0x115   : > { %v457_v33 = vsub.f32 %v393_v44, %v425_v14  ;;  %v340_v34 = vpop.xlane.xlu1 %339  ;;  %v338_v36 = vpop.xlane.xlu0 %337  ;;  %v282_v14 = vmul.f32 0.0078125, %v1337_v52  ;;  %v1387_v41 = vmul.f32 %v280_v22, %v280_v22  ;;  %v1394_v52 = vld [vmem:[%s1594_s1] ss:$0 sm:$0xff] }
 0x116   : > { %842 = vrsqrt.f32 %v520_v17  ;;  %v490_v37 = vmax.f32 %v458_v60, 0.0  ;;  %v396_v38 = vmul.f32 0.0078125, %v340_v34  ;;  %v395_v39 = vmul.f32 0.0078125, %v338_v36 }
 0x117   : > { %844 = vrsqrt.f32 %v519_v45  ;;  %v489_v23 = vmax.f32 %v457_v33, 0.0  ;;  %v1397_v17 = vmul.f32 %v282_v14, %v282_v14  ;;  %v1399_v45 = vmul.f32 %v281_v48, %v281_v48 }
 0x118   : > { %v522_v28 = vadd.f32 1e-05, %v490_v37  ;;  %v460_v29 = vsub.f32 %v396_v38, %v428_v35  ;;  %v459_v27 = vsub.f32 %v395_v39, %v427_v32  ;;  %v1389_v32 = vmul.f32 %v279_v62, %v279_v62 }
 0x119   : > { %v521_v19 = vadd.f32 1e-05, %v489_v23  ;;  %v344_v21 = vpop.xlane.xlu1 %343  ;;  %v342_v24 = vpop.xlane.xlu0 %341  ;;  %v284_v23 = vmul.f32 0.0078125, %v1341_v54 }
 0x11a   : > { %846 = vrsqrt.f32 %v522_v28  ;;  %v492_v49 = vmax.f32 %v460_v29, 0.0  ;;  %v491_v25 = vmax.f32 %v459_v27, 0.0  ;;  %v398_v50 = vmul.f32 0.0078125, %v344_v21 }
 0x11b   : > { %848 = vrsqrt.f32 %v521_v19  ;;  %v397_v51 = vmul.f32 0.0078125, %v342_v24  ;;  %v283_v29 = vmul.f32 0.0078125, %v1343_v55 }
 0x11c   : > { %v839_v35 = vpop.eup %838  ;;  %v524_v53 = vadd.f32 1e-05, %v492_v49  ;;  %v523_v42 = vadd.f32 1e-05, %v491_v25  ;;  %v462_v15 = vsub.f32 %v398_v50, %v1361_v30 }
 0x11d   : > { %v841_v44 = vpop.eup %840  ;;  %v582_v60 = vmul.f32 %v839_v35, %v1149_v3  ;;  %v461_v47 = vsub.f32 %v397_v51, %v1363_v18  ;;  %v348_v33 = vpop.xlane.xlu1 %347 }
 0x11e   : > { %v346_v34 = vpop.xlane.xlu0 %345  ;;  %v581_v36 = vmul.f32 %v841_v44, %v1141_v1  ;;  %850 = vrsqrt.f32 %v524_v53  ;;  %v494_v37 = vmax.f32 %v462_v15, 0.0  ;;  %v400_v38 = vmul.f32 0.0078125, %v348_v33 }
 0x11f   : > { %v621_v39 = vmul.f32 %v1394_v52, %v582_v60  ;;  %852 = vrsqrt.f32 %v523_v42  ;;  %v493_v30 = vmax.f32 %v461_v47, 0.0  ;;  %v399_v31 = vmul.f32 0.0078125, %v346_v34 }
 0x120   : > { %v843_v22 = vpop.eup %842  ;;  %v620_v3 = vmul.f32 %v1394_v52, %v581_v36  ;;  %v526_v62 = vadd.f32 1e-05, %v494_v37  ;;  %v464_v18 = vsub.f32 %v400_v38, %v1365_v20  ;;  %v1423_v53 = vmul.f32 %v283_v29, %v283_v29 }
 0x121   : > { %v845_v28 = vpop.eup %844  ;;  %653 = vst [vmem:[%s1411_s30 + $0x8] sm:$0xff] %v621_v39  ;;  %v584_v1 = vmul.f32 %v843_v22, %v1146_v2  ;;  %v525_v27 = vadd.f32 1e-05, %v493_v30  ;;  %v463_v14 = vsub.f32 %v399_v31, %v1367_v63  ;;  %v352_v54 = vpop.xlane.xlu1 %351  ;;  %v1419_v2 = vmul.f32 %v284_v23, %v284_v23 }
 0x122   : > { %v350_v48 = vpop.xlane.xlu0 %349  ;;  %652 = vst [vmem:[%s1411_s30] sm:$0xff] %v620_v3  ;;  %v583_v20 = vmul.f32 %v845_v28, %v1138_v0  ;;  %854 = vrsqrt.f32 %v526_v62  ;;  %v496_v19 = vmax.f32 %v464_v18, 0.0  ;;  %v402_v55 = vmul.f32 0.0078125, %v352_v54 }
 0x123   : > { %v623_v21 = vmul.f32 %v1394_v52, %v584_v1  ;;  %856 = vrsqrt.f32 %v525_v27  ;;  %v495_v24 = vmax.f32 %v463_v14, 0.0  ;;  %v401_v49 = vmul.f32 0.0078125, %v350_v48 }
 0x124   : > { %v847_v25 = vpop.eup %846  ;;  %v622_v63 = vmul.f32 %v1394_v52, %v583_v20  ;;  %v528_v50 = vadd.f32 1e-05, %v496_v19  ;;  %v466_v51 = vsub.f32 %v402_v55, %v1369_v43 }
 0x125   : > { %v849_v35 = vpop.eup %848  ;;  %655 = vst [vmem:[%s1411_s30 + $0x18] sm:$0xff] %v623_v21  ;;  %v586_v0 = vmul.f32 %v847_v25, %v1154_v4  ;;  %v527_v42 = vadd.f32 1e-05, %v495_v24  ;;  %v465_v15 = vsub.f32 %v401_v49, %v1371_v16  ;;  %v356_v44 = vpop.xlane.xlu1 %355  ;;  %v286_v4 = vmul.f32 0.0078125, %v1345_v56 }
 0x126   : > { %v354_v60 = vpop.xlane.xlu0 %353  ;;  %654 = vst [vmem:[%s1411_s30 + $0x10] sm:$0xff] %v622_v63  ;;  %v585_v47 = vmul.f32 %v849_v35, %v1157_v5  ;;  %858 = vrsqrt.f32 %v528_v50  ;;  %v498_v33 = vmax.f32 %v466_v51, 0.0  ;;  %v404_v34 = vmul.f32 0.0078125, %v356_v44 }
 0x127   : > { %v625_v43 = vmul.f32 %v1394_v52, %v586_v0  ;;  %860 = vrsqrt.f32 %v527_v42  ;;  %v497_v36 = vmax.f32 %v465_v15, 0.0  ;;  %v403_v37 = vmul.f32 0.0078125, %v354_v60 }
 0x128   : > { %v851_v38 = vpop.eup %850  ;;  %v624_v16 = vmul.f32 %v1394_v52, %v585_v47  ;;  %v530_v39 = vadd.f32 1e-05, %v498_v33  ;;  %v468_v30 = vsub.f32 %v404_v34, %v1373_v61  ;;  %v285_v5 = vmul.f32 0.0078125, %v1347_v57 }
 0x129   : > { %v853_v31 = vpop.eup %852  ;;  %657 = vst [vmem:[%s1411_s30 + $0x28] sm:$0xff] %v625_v43  ;;  %v588_v22 = vmul.f32 %v851_v38, %v1162_v6  ;;  %v529_v23 = vadd.f32 1e-05, %v497_v36  ;;  %v467_v3 = vsub.f32 %v403_v37, %v1375_v46  ;;  %v360_v62 = vpop.xlane.xlu1 %359  ;;  %v1441_v6 = vmul.f32 %v286_v4, %v286_v4 }
 0x12a   : > { %v358_v18 = vpop.xlane.xlu0 %357  ;;  %656 = vst [vmem:[%s1411_s30 + $0x20] sm:$0xff] %v624_v16  ;;  %v587_v56 = vmul.f32 %v853_v31, %v1165_v7  ;;  %862 = vrsqrt.f32 %v530_v39  ;;  %v500_v28 = vmax.f32 %v468_v30, 0.0  ;;  %v406_v29 = vmul.f32 0.0078125, %v360_v62 }
 0x12b   : > { %v627_v61 = vmul.f32 %v1394_v52, %v588_v22  ;;  %864 = vrsqrt.f32 %v529_v23  ;;  %v499_v57 = vmax.f32 %v467_v3, 0.0  ;;  %v405_v1 = vmul.f32 0.0078125, %v358_v18 }
 0x12c   : > { %v855_v27 = vpop.eup %854  ;;  %v626_v46 = vmul.f32 %v1394_v52, %v587_v56  ;;  %v532_v14 = vadd.f32 1e-05, %v500_v28  ;;  %v470_v54 = vsub.f32 %v406_v29, %v1381_v26  ;;  %v1445_v20 = vmul.f32 %v285_v5, %v285_v5 }
 0x12d   : > { %v857_v48 = vpop.eup %856  ;;  %659 = vst [vmem:[%s1411_s30 + $0x38] sm:$0xff] %v627_v61  ;;  %v590_v7 = vmul.f32 %v855_v27, %v1170_v8  ;;  %v531_v19 = vadd.f32 1e-05, %v499_v57  ;;  %v469_v55 = vsub.f32 %v405_v1, %v1385_v40  ;;  %v364_v21 = vpop.xlane.xlu1 %363  ;;  %v288_v8 = vmul.f32 0.0078125, %v1349_v58 }
 0x12e   : > { %v362_v24 = vpop.xlane.xlu0 %361  ;;  %658 = vst [vmem:[%s1411_s30 + $0x30] sm:$0xff] %v626_v46  ;;  %v589_v49 = vmul.f32 %v857_v48, %v1173_v9  ;;  %866 = vrsqrt.f32 %v532_v14  ;;  %v502_v25 = vmax.f32 %v470_v54, 0.0  ;;  %v408_v63 = vmul.f32 0.0078125, %v364_v21  ;;  %v1643_v46 = vld [vmem:[#allocation27_spill] sm:$0xff]  ;;  %v1644_v14 = vld [vmem:[#allocation8_spill] sm:$0xff]  ;;  %v1645_v21 = vld [vmem:[#allocation9_spill] sm:$0xff] }
 0x12f   : > { %v629_v26 = vmul.f32 %v1394_v52, %v590_v7  ;;  %868 = vrsqrt.f32 %v531_v19  ;;  %v501_v50 = vmax.f32 %v469_v55, 0.0  ;;  %v407_v51 = vmul.f32 0.0078125, %v362_v24 }
 0x130   : > { %v859_v35 = vpop.eup %858  ;;  %v628_v40 = vmul.f32 %v1394_v52, %v589_v49  ;;  %v534_v0 = vadd.f32 1e-05, %v502_v25  ;;  %v472_v42 = vsub.f32 %v408_v63, %v1387_v41  ;;  %v287_v9 = vmul.f32 0.0078125, %v1351_v59 }
 0x131   : > { %v861_v15 = vpop.eup %860  ;;  %661 = vst [vmem:[%s1411_s30 + $0x48] sm:$0xff] %v629_v26  ;;  %v592_v44 = vmul.f32 %v859_v35, %v1178_v10  ;;  %v533_v60 = vadd.f32 1e-05, %v501_v50  ;;  %v471_v47 = vsub.f32 %v407_v51, %v1389_v32  ;;  %v368_v33 = vpop.xlane.xlu1 %367  ;;  %v1463_v10 = vmul.f32 %v288_v8, %v288_v8 }
 0x132   : > { %v366_v34 = vpop.xlane.xlu0 %365  ;;  %660 = vst [vmem:[%s1411_s30 + $0x40] sm:$0xff] %v628_v40  ;;  %v591_v58 = vmul.f32 %v861_v15, %v1181_v11  ;;  %870 = vrsqrt.f32 %v534_v0  ;;  %v504_v43 = vmax.f32 %v472_v42, 0.0  ;;  %v410_v36 = vmul.f32 0.0078125, %v368_v33  ;;  %v1646_v42 = vld [vmem:[#allocation10_spill] sm:$0xff]  ;;  %v1647_v33 = vld [vmem:[#allocation11_spill] sm:$0xff] }
 0x133   : > { %v631_v41 = vmul.f32 %v1394_v52, %v592_v44  ;;  %872 = vrsqrt.f32 %v533_v60  ;;  %v503_v59 = vmax.f32 %v471_v47, 0.0  ;;  %v409_v37 = vmul.f32 0.0078125, %v366_v34 }
 0x134   : > { %v863_v38 = vpop.eup %862  ;;  %v630_v32 = vmul.f32 %v1394_v52, %v591_v58  ;;  %v536_v4 = vadd.f32 1e-05, %v504_v43  ;;  %v474_v16 = vsub.f32 %v410_v36, %v1397_v17  ;;  %v1467_v30 = vmul.f32 %v287_v9, %v287_v9 }
 0x135   : > { %v865_v39 = vpop.eup %864  ;;  %663 = vst [vmem:[%s1411_s30 + $0x58] sm:$0xff] %v631_v41  ;;  %v594_v11 = vmul.f32 %v863_v38, %v1186_v12  ;;  %v535_v31 = vadd.f32 1e-05, %v503_v59  ;;  %v473_v5 = vsub.f32 %v409_v37, %v1399_v45  ;;  %v372_v22 = vpop.xlane.xlu1 %371  ;;  %v1642_v12 = vld [vmem:[#allocation26_spill] sm:$0xff]  ;;  %v1648_v37 = vld [vmem:[#allocation28_spill] sm:$0xff] }
 0x136   : > { %v370_v23 = vpop.xlane.xlu0 %369  ;;  %662 = vst [vmem:[%s1411_s30 + $0x50] sm:$0xff] %v630_v32  ;;  %v593_v3 = vmul.f32 %v865_v39, %v1189_v13  ;;  %874 = vrsqrt.f32 %v536_v4  ;;  %v506_v62 = vmax.f32 %v474_v16, 0.0  ;;  %v412_v18 = vmul.f32 0.0078125, %v372_v22  ;;  %v1649_v39 = vld [vmem:[#allocation29_spill] sm:$0xff] }
 0x137   : > { %v633_v17 = vmul.f32 %v1394_v52, %v594_v11  ;;  %876 = vrsqrt.f32 %v535_v31  ;;  %v505_v56 = vmax.f32 %v473_v5, 0.0  ;;  %v411_v28 = vmul.f32 0.0078125, %v370_v23  ;;  %v1650_v31 = vld [vmem:[#allocation12_spill] sm:$0xff] }
 0x138   : > { %v867_v29 = vpop.eup %866  ;;  %v290_v61 = vmul.f32 0.0078125, %v1642_v12  ;;  %v632_v45 = vmul.f32 %v1394_v52, %v593_v3  ;;  %v538_v57 = vadd.f32 1e-05, %v506_v62  ;;  %v476_v1 = vsub.f32 %v412_v18, %v1419_v2  ;;  %v1651_v18 = vld [vmem:[#allocation13_spill] sm:$0xff] }
 0x139   : > { %v869_v27 = vpop.eup %868  ;;  %v289_v13 = vmul.f32 0.0078125, %v1643_v46  ;;  %665 = vst [vmem:[%s1411_s30 + $0x68] sm:$0xff] %v633_v17  ;;  %v596_v54 = vmul.f32 %v867_v29, %v1644_v14  ;;  %v537_v48 = vadd.f32 1e-05, %v505_v56  ;;  %v475_v7 = vsub.f32 %v411_v28, %v1423_v53  ;;  %v376_v19 = vpop.xlane.xlu1 %375 }
 0x13a   : > { %v374_v55 = vpop.xlane.xlu0 %373  ;;  %664 = vst [vmem:[%s1411_s30 + $0x60] sm:$0xff] %v632_v45  ;;  %v595_v24 = vmul.f32 %v869_v27, %v1645_v21  ;;  %878 = vrsqrt.f32 %v538_v57  ;;  %v508_v49 = vmax.f32 %v476_v1, 0.0  ;;  %v414_v25 = vmul.f32 0.0078125, %v376_v19 }
 0x13b   : > { %v635_v2 = vmul.f32 %v1394_v52, %v596_v54  ;;  %880 = vrsqrt.f32 %v537_v48  ;;  %v507_v63 = vmax.f32 %v475_v7, 0.0  ;;  %v413_v26 = vmul.f32 0.0078125, %v374_v55  ;;  %v1653_v55 = vld [vmem:[#allocation15_spill] sm:$0xff] }
 0x13c   : > { %v871_v50 = vpop.eup %870  ;;  %v450_v51 = vmul.f32 %v290_v61, %v290_v61  ;;  %v634_v35 = vmul.f32 %v1394_v52, %v595_v24  ;;  %v540_v53 = vadd.f32 1e-05, %v508_v49  ;;  %v478_v8 = vsub.f32 %v414_v25, %v1441_v6 }
 0x13d   : > { %v873_v40 = vpop.eup %872  ;;  %v449_v0 = vmul.f32 %v289_v13, %v289_v13  ;;  %667 = vst [vmem:[%s1411_s30 + $0x78] sm:$0xff] %v635_v2  ;;  %v598_v15 = vmul.f32 %v871_v50, %v1646_v42  ;;  %v539_v9 = vadd.f32 1e-05, %v507_v63  ;;  %v477_v44 = vsub.f32 %v413_v26, %v1445_v20  ;;  %v380_v60 = vpop.xlane.xlu1 %379  ;;  %v1652_v13 = vld [vmem:[#allocation14_spill] sm:$0xff] }
 0x13e   : > { %v378_v47 = vpop.xlane.xlu0 %377  ;;  %666 = vst [vmem:[%s1411_s30 + $0x70] sm:$0xff] %v634_v35  ;;  %v597_v34 = vmul.f32 %v873_v40, %v1647_v33  ;;  %882 = vrsqrt.f32 %v540_v53  ;;  %v510_v58 = vmax.f32 %v478_v8, 0.0  ;;  %v416_v43 = vmul.f32 0.0078125, %v380_v60  ;;  %v1654_v8 = vld [vmem:[#allocation16_spill] sm:$0xff] }
 0x13f   : > { %v637_v36 = vmul.f32 %v1394_v52, %v598_v15  ;;  %884 = vrsqrt.f32 %v539_v9  ;;  %v509_v6 = vmax.f32 %v477_v44, 0.0  ;;  %v415_v41 = vmul.f32 0.0078125, %v378_v47  ;;  %v1655_v15 = vld [vmem:[#allocation17_spill] sm:$0xff] }
 0x140   : > { %v875_v59 = vpop.eup %874  ;;  %v292_v38 = vmul.f32 0.0078125, %v1648_v37  ;;  %v636_v20 = vmul.f32 %v1394_v52, %v597_v34  ;;  %v542_v32 = vadd.f32 1e-05, %v510_v58  ;;  %v480_v4 = vsub.f32 %v416_v43, %v1463_v10 }
 0x141   : > { %v877_v16 = vpop.eup %876  ;;  %v291_v11 = vmul.f32 0.0078125, %v1649_v39  ;;  %669 = vst [vmem:[%s1411_s30 + $0x88] sm:$0xff] %v637_v36  ;;  %v600_v5 = vmul.f32 %v875_v59, %v1650_v31  ;;  %v541_v22 = vadd.f32 1e-05, %v509_v6  ;;  %v479_v23 = vsub.f32 %v415_v41, %v1467_v30  ;;  %v384_v3 = vpop.xlane.xlu1 %383  ;;  %v1656_v36 = vld [vmem:[#allocation18_spill] sm:$0xff]  ;;  %v1657_v59 = vld [vmem:[#allocation19_spill] sm:$0xff] }
 0x142   : > { %v382_v62 = vpop.xlane.xlu0 %381  ;;  %668 = vst [vmem:[%s1411_s30 + $0x80] sm:$0xff] %v636_v20  ;;  %v599_v17 = vmul.f32 %v877_v16, %v1651_v18  ;;  %886 = vrsqrt.f32 %v542_v32  ;;  %v512_v56 = vmax.f32 %v480_v4, 0.0  ;;  %v418_v28 = vmul.f32 0.0078125, %v384_v3  ;;  %v1658_v16 = vld [vmem:[#allocation20_spill] sm:$0xff] }
 0x143   : > { %v639_v10 = vmul.f32 %v1394_v52, %v600_v5  ;;  %888 = vrsqrt.f32 %v541_v22  ;;  %v511_v29 = vmax.f32 %v479_v23, 0.0  ;;  %v417_v12 = vmul.f32 0.0078125, %v382_v62  ;;  %v1660_v62 = vld [vmem:[#allocation22_spill] sm:$0xff] }
 0x144   : > { %v879_v61 = vpop.eup %878  ;;  %v452_v45 = vmul.f32 %v292_v38, %v292_v38  ;;  %v638_v57 = vmul.f32 %v1394_v52, %v599_v17  ;;  %v544_v30 = vadd.f32 1e-05, %v512_v56  ;;  %v482_v1 = vsub.f32 %v418_v28, %v450_v51  ;;  %v1661_v17 = vld [vmem:[#allocation23_spill] sm:$0xff] }
 0x145   : > { %v881_v27 = vpop.eup %880  ;;  %v451_v46 = vmul.f32 %v291_v11, %v291_v11  ;;  %671 = vst [vmem:[%s1411_s30 + $0x98] sm:$0xff] %v639_v10  ;;  %v602_v14 = vmul.f32 %v879_v61, %v1652_v13  ;;  %v543_v54 = vadd.f32 1e-05, %v511_v29  ;;  %v481_v48 = vsub.f32 %v417_v12, %v449_v0  ;;  %v388_v7 = vpop.xlane.xlu1 %387  ;;  %v1659_v11 = vld [vmem:[#allocation21_spill] sm:$0xff]  ;;  %v1662_v61 = vld [vmem:[#allocation24_spill] sm:$0xff] }
 0x146   : > { %v386_v19 = vpop.xlane.xlu0 %385  ;;  %670 = vst [vmem:[%s1411_s30 + $0x90] sm:$0xff] %v638_v57  ;;  %v601_v21 = vmul.f32 %v881_v27, %v1653_v55  ;;  %890 = vrsqrt.f32 %v544_v30  ;;  %v514_v24 = vmax.f32 %v482_v1, 0.0  ;;  %v420_v49 = vmul.f32 0.0078125, %v388_v7  ;;  %v1663_v57 = vld [vmem:[#allocation25_spill] sm:$0xff] }
 0x147   : > { %v641_v25 = vmul.f32 %v1394_v52, %v602_v14  ;;  %892 = vrsqrt.f32 %v543_v54  ;;  %v513_v2 = vmax.f32 %v481_v48, 0.0  ;;  %v419_v63 = vmul.f32 0.0078125, %v386_v19 }
 0x148   : > { %v883_v26 = vpop.eup %882  ;;  %v640_v50 = vmul.f32 %v1394_v52, %v601_v21  ;;  %v546_v51 = vadd.f32 1e-05, %v514_v24  ;;  %v484_v35 = vsub.f32 %v420_v49, %v452_v45 }
 0x149   : > { %v885_v53 = vpop.eup %884  ;;  %673 = vst [vmem:[%s1411_s30 + $0xa8] sm:$0xff] %v641_v25  ;;  %v604_v40 = vmul.f32 %v883_v26, %v1654_v8  ;;  %v545_v0 = vadd.f32 1e-05, %v513_v2  ;;  %v483_v42 = vsub.f32 %v419_v63, %v451_v46 }
 0x14a   : > { %672 = vst [vmem:[%s1411_s30 + $0xa0] sm:$0xff] %v640_v50  ;;  %v603_v9 = vmul.f32 %v885_v53, %v1655_v15  ;;  %894 = vrsqrt.f32 %v546_v51  ;;  %v516_v44 = vmax.f32 %v484_v35, 0.0 }
 0x14b   : > { %v643_v60 = vmul.f32 %v1394_v52, %v604_v40  ;;  %896 = vrsqrt.f32 %v545_v0  ;;  %v515_v47 = vmax.f32 %v483_v42, 0.0 }
 0x14c   : > { %v887_v33 = vpop.eup %886  ;;  %v642_v34 = vmul.f32 %v1394_v52, %v603_v9  ;;  %v548_v58 = vadd.f32 1e-05, %v516_v44 }
 0x14d   : > { %v889_v43 = vpop.eup %888  ;;  %675 = vst [vmem:[%s1411_s30 + $0xb8] sm:$0xff] %v643_v60  ;;  %v606_v6 = vmul.f32 %v887_v33, %v1656_v36  ;;  %v547_v41 = vadd.f32 1e-05, %v515_v47 }
 0x14e   : > { %674 = vst [vmem:[%s1411_s30 + $0xb0] sm:$0xff] %v642_v34  ;;  %v605_v37 = vmul.f32 %v889_v43, %v1657_v59  ;;  %898 = vrsqrt.f32 %v548_v58 }
 0x14f   : > { %v645_v38 = vmul.f32 %v1394_v52, %v606_v6  ;;  %900 = vrsqrt.f32 %v547_v41 }
 0x150   : > { %v891_v20 = vpop.eup %890  ;;  %v644_v32 = vmul.f32 %v1394_v52, %v605_v37 }
 0x151   : > { %v893_v4 = vpop.eup %892  ;;  %677 = vst [vmem:[%s1411_s30 + $0xc8] sm:$0xff] %v645_v38  ;;  %v608_v39 = vmul.f32 %v891_v20, %v1658_v16 }
 0x152   : > { %676 = vst [vmem:[%s1411_s30 + $0xc0] sm:$0xff] %v644_v32  ;;  %v607_v31 = vmul.f32 %v893_v4, %v1659_v11 }
 0x153   : > { %v647_v5 = vmul.f32 %v1394_v52, %v608_v39 }
 0x154   : > { %v895_v22 = vpop.eup %894  ;;  %v646_v23 = vmul.f32 %v1394_v52, %v607_v31 }
 0x155   : > { %v897_v3 = vpop.eup %896  ;;  %679 = vst [vmem:[%s1411_s30 + $0xd8] sm:$0xff] %v647_v5  ;;  %v610_v18 = vmul.f32 %v895_v22, %v1660_v62 }
 0x156   : > { %678 = vst [vmem:[%s1411_s30 + $0xd0] sm:$0xff] %v646_v23  ;;  %v609_v56 = vmul.f32 %v897_v3, %v1661_v17 }
 0x157   : > { %v649_v28 = vmul.f32 %v1394_v52, %v610_v18 }
 0x158   : > { %v899_v10 = vpop.eup %898  ;;  %v648_v29 = vmul.f32 %v1394_v52, %v609_v56 }
 0x159   : > { %v901_v12 = vpop.eup %900  ;;  %681 = vst [vmem:[%s1411_s30 + $0xe8] sm:$0xff] %v649_v28  ;;  %v612_v45 = vmul.f32 %v899_v10, %v1662_v61 }
 0x15a   : > { %680 = vst [vmem:[%s1411_s30 + $0xe0] sm:$0xff] %v648_v29  ;;  %v611_v30 = vmul.f32 %v901_v12, %v1663_v57 }
 0x15b   : > { %v651_v1 = vmul.f32 %v1394_v52, %v612_v45 }
 0x15c   : > { %v650_v27 = vmul.f32 %v1394_v52, %v611_v30 }
 0x15d   : > { %683 = vst [vmem:[%s1411_s30 + $0xf8] sm:$0xff] %v651_v1 }
 0x15e   : > { %682 = vst [vmem:[%s1411_s30 + $0xf0] sm:$0xff] %v650_v27 }
 0x15f   : > { %945 = shalt.err (!%p942_p2)
}
 0x160   : > { %s946_s24 = scalar_lea.hbm %s1544_s14, 4096  ;;  %s950_s29 = scalar_lea.hbm %s1595_s2, 8192 }
 0x161   : > { %p947_p4 = scmp.ne.s32.totalorder %s1544_s14, %s946_s24  ;;  %p951_p9 = scmp.lt.u32.totalorder %s1544_s14, %s1595_s2 }
 0x162   : > { %p952_p1 = scmp.lt.u32.totalorder %s950_s29, %s946_s24  ;;  %p954_p6 = scmp.lt.u32.totalorder %s946_s24, %s1544_s14 }
 0x163   : > { %p948_p5 = pnand %p947_p4, %p1664_p11 }
 0x164   : > { %p953_p3 = por %p952_p1, %p951_p9 }
 0x165   : > { %p949_p7 = pneg %p948_p5 }
 0x166   : > { %p955_p12 = por %p954_p6, %p953_p3 }
 0x168   : > { %p956_p13 = pnand %p955_p12, %p949_p7 }
 0x16a   : > { %959 = shalt.err (!%p956_p13)
}
 0x16b   : > { %s1004_s20 = smov 128   ;;  %s1005_s28 = smov 8  }
 0x16c   : > { %790 = dma.vmem_to_hbm [thread:$0]  (%p1664_p11), %s1546_s4, 4096, %s1544_s14, %s685_s13, %s1004_s20, %s1004_s20, %s1005_s28  }
 0x16d PF: > { %s713_s30 = sand.u32 1, %s986_s9   ;;  %p1665_p8 = scmp.ne.s32.totalorder %s1618_s22, 0 }
 0x16e   : > { %p1666_p10 = scmp.ge.s32.totalorder %s998_s12, 2  ;;  %s714_s3 = scalar_lea.sflag [#allocation4], %s713_s30 }
 0x170   : > { %p797_p0 = pnand %p1666_p10, %p1665_p8 }
 0x172   : > { %981 = dma.done.wait (!%p797_p0), %s714_s3, 4096  }
 0x173   : > { %983 = vsyncadd (!%p797_p0), %s714_s3, 4294963200  ;;  %p15_p2 = scmp.ge.s32.totalorder %s1046_s15, 4   ;;  %s1667_s9 = smov %s990_s10 }
 0x174   : > { %s1668_s10 = smov %s994_s11  ;;  %s1669_s11 = smov %s1058_s18 }
 0x175   : > { %s1670_s12 = smov %s1046_s15  ;;  %17 = sbr.rel (!%p15_p2) target bundleno = 5 (0x5), region = 73 }
 0x17c   :  { %719 = vsyncpa [#allocation3], 1 }
 0x17d   :  { %721 = vsyncpa [#allocation3 + $0x1], 1 }
 0x17e   :  { %722 = vsyncpa [#allocation4], 1 }
 0x17f   :  { %724 = vsyncpa [#allocation4 + $0x1], 1 }

</bundles_post_ra>
